<compile_context>
chip_gen: v7x
topology: tpu7x:2x2x1
jax: 0.10.0
libtpu: 0.0.40
codegen_flags: <defaults>
</compile_context>

<pallas_src>
import functools

import jax
import jax.numpy as jnp
from jax.experimental import pallas as pl
from jax.experimental.pallas import tpu as pltpu

_SUBLANE = 8
_LANE = 128
_WIDE_ALIGN = 256           # pad large feature dims to 256 (full v6e/v7x MXU width)
_DEFAULT_BATCH_TILE = 256   # raise to 512 on v6e for large B (128 MiB VMEM headroom)
_DEFAULT_OUT_TILE = 1024    # N tile over the last layer's output features


def _round_up(n: int, m: int) -> int:
    return ((n + m - 1) // m) * m


def _feature_pad(d: int) -> int:
    # 256-alignment only when the true dim is already >= 256; small dims stay at
    # the 128-lane minimum (also matches v5e's 128x128 MXU).
    return _round_up(d, _WIDE_ALIGN) if d >= _WIDE_ALIGN else _round_up(d, _LANE)


def _pick_divisor_tile(total: int, preferred: int) -> int:
    """Largest multiple of 128 that divides `total` and is <= preferred."""
    if total <= preferred:
        return total
    best = _LANE
    t = _LANE
    while t <= preferred:
        if total % t == 0:
            best = t
        t += _LANE
    return best


def _mlp_fused_kernel(*refs, n_layers: int):
    """Fused Linear->Tanh->...->Linear on one (batch tile, output-feature tile).

    refs = (x, w0, b0, ..., w_{L-1}, b_{L-1}, out, h_scratch)
    Inter-layer activations never touch HBM.
    """
    x_ref = refs[0]
    o_ref = refs[1 + 2 * n_layers]
    h_ref = refs[2 + 2 * n_layers]   # bf16 VMEM scratch: activation feeding the last layer

    # Hidden stack is computed once per batch tile (first N tile) and stays
    # resident in VMEM scratch across the "arbitrary" N grid axis.
    @pl.when(pl.program_id(1) == 0)
    def _():
        h = x_ref[...].astype(jnp.float32)
        for i in range(n_layers - 1):
            w = refs[1 + 2 * i][...]        # bf16 [d_in_p, d_out_p]
            b = refs[2 + 2 * i][...]        # f32  [1, d_out_p]
            # bf16 MXU matmul with f32 accumulation; bias add (VPU) and tanh
            # (EUP) stay in f32 -- v5e has no bf16 elementwise path.
            acc = jnp.dot(h.astype(jnp.bfloat16), w,
                          preferred_element_type=jnp.float32)
            h = jnp.tanh(acc + b)
        h_ref[...] = h.astype(jnp.bfloat16)

    # Last layer: one N tile of the output features per grid step.
    w_last = refs[1 + 2 * (n_layers - 1)][...]   # bf16 [d_hid_p, tile_n]
    b_last = refs[2 + 2 * (n_layers - 1)][...]   # f32  [1, tile_n]
    y = jnp.dot(h_ref[...], w_last, preferred_element_type=jnp.float32) + b_last
    o_ref[...] = y.astype(o_ref.dtype)


def prepare_params(params):
    """One-time lane-dense padding + bf16 cast of the weights (NOT per forward).

    Zero-padded W rows/cols + zero bias and tanh(0)=0 keep the padding exact.
    """
    dims = [params[0][0].shape[0]] + [w.shape[1] for (w, _) in params]
    dims_p = [_feature_pad(d) for d in dims]
    padded = []
    for i, (w, b) in enumerate(params):
        wp = jnp.pad(w, ((0, dims_p[i] - dims[i]),
                         (0, dims_p[i + 1] - dims[i + 1]))).astype(jnp.bfloat16)
        bp = jnp.pad(jnp.reshape(b, (1, -1)),
                     ((0, 0), (0, dims_p[i + 1] - dims[i + 1]))).astype(jnp.float32)
        padded.append((wp, bp))
    return {"padded": padded, "dims": dims, "dims_p": dims_p}


def mlp_forward(x: jax.Array, prepared, *,
                batch_tile: int = _DEFAULT_BATCH_TILE,
                out_tile: int = _DEFAULT_OUT_TILE) -> jax.Array:
    """Fused Pallas MLP forward. x: [B, D_in]; prepared: output of prepare_params."""
    padded = prepared["padded"]
    dims = prepared["dims"]
    dims_p = prepared["dims_p"]
    n_layers = len(padded)
    B, d_in = x.shape
    assert d_in == dims[0], "input feature dim mismatch"

    # ---- batch tiling (outer, "parallel" -> megacore sharding) ----
    tile_b = _round_up(B, _SUBLANE) if B <= batch_tile else batch_tile
    b_pad = _round_up(B, tile_b)
    n_bt = b_pad // tile_b

    # ---- output-feature (N) tiling of the last layer (inner, "arbitrary") ----
    d_hid_p = dims_p[-2]
    d_out_p = dims_p[-1]
    tile_n = _pick_divisor_tile(d_out_p, out_tile)
    n_nt = d_out_p // tile_n

    x_p = jnp.pad(x, ((0, b_pad - B), (0, dims_p[0] - dims[0])))

    flat_wb = []
    for (wp, bp) in padded:
        flat_wb += [wp, bp]

    kernel = functools.partial(_mlp_fused_kernel, n_layers=n_layers)
    out_shape = jax.ShapeDtypeStruct((b_pad, d_out_p), x.dtype)

    # ---- VMEM budget: resident blocks + headroom ----
    resident = 2 * tile_b * dims_p[0] * 4                       # x tile (double-buffered, f32)
    for li in range(n_layers - 1):                              # resident hidden W (bf16) + b (f32)
        resident += dims_p[li] * dims_p[li + 1] * 2 + dims_p[li + 1] * 4
    last_bufs = 1 if n_nt == 1 else 2
    resident += last_bufs * (d_hid_p * tile_n * 2 + tile_n * 4)  # last-layer W/b tiles
    resident += 2 * tile_b * tile_n * 4                          # out tile (double-buffered)
    resident += tile_b * d_hid_p * 2                             # hidden-activation scratch
    vmem_limit = int(min(2 * resident + (16 << 20), 112 << 20))

    cost = pl.CostEstimate(
        flops=2 * b_pad * sum(dims_p[i] * dims_p[i + 1] for i in range(n_layers)),
        transcendentals=b_pad * sum(dims_p[1:-1]),
        bytes_accessed=(int(x_p.size) * x_p.dtype.itemsize
                        + sum(int(a.size) * a.dtype.itemsize for a in flat_wb)
                        + b_pad * d_out_p * x.dtype.itemsize),
    )

    def build(single_buffer_invariants: bool):
        def inv_spec(shape):
            # Grid-invariant block: resident across the whole grid; single buffer
            # halves the dominant VMEM consumer when supported.
            if single_buffer_invariants:
                return pl.BlockSpec(shape, lambda i, j: (0, 0),
                                    pipeline_mode=pl.Buffered(1))
            return pl.BlockSpec(shape, lambda i, j: (0, 0))

        in_specs = [pl.BlockSpec((tile_b, dims_p[0]), lambda i, j: (i, 0))]
        for li in range(n_layers - 1):
            wp, bp = padded[li]
            in_specs.append(inv_spec(wp.shape))
            in_specs.append(inv_spec(bp.shape))
        if n_nt == 1:
            in_specs.append(inv_spec((d_hid_p, tile_n)))
            in_specs.append(inv_spec((1, tile_n)))
        else:
            # Changes with j -> keep default double-buffering to hide its DMA.
            in_specs.append(pl.BlockSpec((d_hid_p, tile_n), lambda i, j: (0, j)))
            in_specs.append(pl.BlockSpec((1, tile_n), lambda i, j: (0, j)))

        return pl.pallas_call(
            kernel,
            out_shape=out_shape,
            grid=(n_bt, n_nt),
            in_specs=in_specs,
            out_specs=pl.BlockSpec((tile_b, tile_n), lambda i, j: (i, j)),
            scratch_shapes=[pltpu.VMEM((tile_b, d_hid_p), jnp.bfloat16)],
            compiler_params=pltpu.CompilerParams(
                dimension_semantics=("parallel", "arbitrary"),
                vmem_limit_bytes=vmem_limit),
            cost_estimate=cost,
        )

    try:
        out_p = build(True)(x_p, *flat_wb)
    except Exception:
        # pl.Buffered(1) unsupported on this jax version -> default buffering.
        out_p = build(False)(x_p, *flat_wb)

    # Slice back to true batch / output width.
    return out_p[:B, :dims[-1]]


def init_mlp_params(sizes, key):
    """Deterministic init matching nn.Linear shapes; W kept transposed [in, out]."""
    params = []
    for i in range(len(sizes) - 1):
        fan_in, fan_out = sizes[i], sizes[i + 1]
        key, kw, kb = jax.random.split(key, 3)
        bound = 1.0 / jnp.sqrt(jnp.float32(fan_in))
        w = jax.random.uniform(kw, (fan_in, fan_out), jnp.float32, -bound, bound)
        b = jax.random.uniform(kb, (1, fan_out), jnp.float32, -bound, bound)
        params.append((w, b))
    return params


def mlp_forward_ref(x, params):
    """Pure-JAX f32 reference."""
    n_layers = len(params)
    for i, (w, b) in enumerate(params):
        x = x @ w + b
        if i < n_layers - 1:
            x = jnp.tanh(x)
    return x


def mlp_forward_ref_bf16(x, params):
    """Pure-JAX reference matching the kernel's numerics (bf16 MXU, f32 accum/epilogue)."""
    n_layers = len(params)
    h = x
    for i, (w, b) in enumerate(params):
        h = jnp.dot(h.astype(jnp.bfloat16), w.astype(jnp.bfloat16),
                    preferred_element_type=jnp.float32) + b
        if i < n_layers - 1:
            h = jnp.tanh(h)
    return h


if __name__ == "__main__":
    key = jax.random.PRNGKey(0)
    key, kx = jax.random.split(key)

    # Small ClipCap-like configuration: prefix feature 32 -> hidden 64 -> out 48
    sizes = (32, 64, 48)
    batch = 8

    x = jax.random.normal(kx, (batch, sizes[0]), jnp.float32)
    params = init_mlp_params(sizes, key)
    prepared = prepare_params(params)       # one-time pad + bf16 cast (cached)

    out = mlp_forward(x, prepared)
    out = jax.block_until_ready(out)

    assert out.shape == (batch, sizes[-1])

    # Numerics-matched reference (same bf16 cast points): tight tolerance.
    ref_matched = mlp_forward_ref_bf16(x, params)
    assert jnp.allclose(out, ref_matched, atol=2e-3, rtol=2e-3), \
        "mismatch vs bf16-matched reference"

    # Full-f32 reference: loosened tolerance for bf16 MXU inputs w/ f32 accumulation.
    ref = mlp_forward_ref(x, params)
    assert jnp.allclose(out, ref, atol=5e-2, rtol=5e-2), "mismatch vs f32 reference"

    print("KERNEL_OK")
</pallas_src>

<mosaic_0001>
module attributes {stable_mosaic.version = 11 : i64} {
  func.func @_mlp_fused_kernel(%arg0: i32, %arg1: i32, %arg2: memref<8x128xf32, #tpu.memory_space<vmem>>, %arg3: memref<128x128xbf16, #tpu.memory_space<vmem>>, %arg4: memref<1x128xf32, #tpu.memory_space<vmem>>, %arg5: memref<128x128xbf16, #tpu.memory_space<vmem>>, %arg6: memref<1x128xf32, #tpu.memory_space<vmem>>, %arg7: memref<8x128xf32, #tpu.memory_space<vmem>>, %arg8: memref<8x128xbf16, #tpu.memory_space<vmem>>) attributes {dimension_semantics = [#tpu.dimension_semantics<parallel>, #tpu.dimension_semantics<arbitrary>], iteration_bounds = array<i64: 1, 1>, scalar_prefetch = 0 : i64, scratch_operands = 1 : i64, tpu.core_type = #tpu.core_type<tc>, window_params = [{transform_indices = @transform_0, window_bounds = array<i64: 8, 128>}, {pipeline_mode = #tpu.pipeline_mode<synchronous>, transform_indices = @transform_1, window_bounds = array<i64: 128, 128>}, {pipeline_mode = #tpu.pipeline_mode<synchronous>, transform_indices = @transform_2, window_bounds = array<i64: 1, 128>}, {pipeline_mode = #tpu.pipeline_mode<synchronous>, transform_indices = @transform_3, window_bounds = array<i64: 128, 128>}, {pipeline_mode = #tpu.pipeline_mode<synchronous>, transform_indices = @transform_4, window_bounds = array<i64: 1, 128>}, {transform_indices = @transform_5, window_bounds = array<i64: 8, 128>}]} {
    %c0_i32 = arith.constant 0 : i32
    %0 = arith.cmpi eq, %arg1, %c0_i32 : i32
    %1 = arith.extui %0 : i1 to i32
    %c0_i32_0 = arith.constant 0 : i32
    %2 = arith.cmpi ne, %1, %c0_i32_0 : i32
    scf.if %2 {
      %c0_8 = arith.constant 0 : index
      %c0_9 = arith.constant 0 : index
      %10 = vector.load %arg2[%c0_8, %c0_9] : memref<8x128xf32, #tpu.memory_space<vmem>>, vector<8x128xf32>
      %c0_10 = arith.constant 0 : index
      %c0_11 = arith.constant 0 : index
      %11 = vector.load %arg3[%c0_10, %c0_11] : memref<128x128xbf16, #tpu.memory_space<vmem>>, vector<128x128xbf16>
      %c0_12 = arith.constant 0 : index
      %c0_13 = arith.constant 0 : index
      %12 = vector.load %arg4[%c0_12, %c0_13] : memref<1x128xf32, #tpu.memory_space<vmem>>, vector<1x128xf32>
      %13 = arith.truncf %10 : vector<8x128xf32> to vector<8x128xbf16>
      %cst_14 = arith.constant dense<0.000000e+00> : vector<8x128xf32>
      %14 = tpu.matmul %13, %11, %cst_14 {dimension_numbers = #tpu.dot_dimension_numbers<[1], [0], [0], [1], [0, 0, 1, 1], [], []>} : vector<8x128xbf16>, vector<128x128xbf16>, vector<8x128xf32> -> vector<8x128xf32>
      %15 = vector.broadcast %12 : vector<1x128xf32> to vector<8x128xf32>
      %16 = arith.addf %14, %15 : vector<8x128xf32>
      %17 = math.tanh %16 : vector<8x128xf32>
      %18 = arith.truncf %17 : vector<8x128xf32> to vector<8x128xbf16>
      %c0_15 = arith.constant 0 : index
      %c0_16 = arith.constant 0 : index
      %19 = vector.load %arg8[%c0_15, %c0_16] : memref<8x128xbf16, #tpu.memory_space<vmem>>, vector<8x128xbf16>
      tpu.vector_store %arg8[%c0_15, %c0_16], %18 {strides = array<i32>} : memref<8x128xbf16, #tpu.memory_space<vmem>>, vector<8x128xbf16>,
    } else {
    }
    %c0 = arith.constant 0 : index
    %c0_1 = arith.constant 0 : index
    %3 = vector.load %arg5[%c0, %c0_1] : memref<128x128xbf16, #tpu.memory_space<vmem>>, vector<128x128xbf16>
    %c0_2 = arith.constant 0 : index
    %c0_3 = arith.constant 0 : index
    %4 = vector.load %arg6[%c0_2, %c0_3] : memref<1x128xf32, #tpu.memory_space<vmem>>, vector<1x128xf32>
    %c0_4 = arith.constant 0 : index
    %c0_5 = arith.constant 0 : index
    %5 = vector.load %arg8[%c0_4, %c0_5] : memref<8x128xbf16, #tpu.memory_space<vmem>>, vector<8x128xbf16>
    %cst = arith.constant dense<0.000000e+00> : vector<8x128xf32>
    %6 = tpu.matmul %5, %3, %cst {dimension_numbers = #tpu.dot_dimension_numbers<[1], [0], [0], [1], [0, 0, 1, 1], [], []>} : vector<8x128xbf16>, vector<128x128xbf16>, vector<8x128xf32> -> vector<8x128xf32>
    %7 = vector.broadcast %4 : vector<1x128xf32> to vector<8x128xf32>
    %8 = arith.addf %6, %7 : vector<8x128xf32>
    %c0_6 = arith.constant 0 : index
    %c0_7 = arith.constant 0 : index
    %9 = vector.load %arg7[%c0_6, %c0_7] : memref<8x128xf32, #tpu.memory_space<vmem>>, vector<8x128xf32>
    tpu.vector_store %arg7[%c0_6, %c0_7], %8 {strides = array<i32>} : memref<8x128xf32, #tpu.memory_space<vmem>>, vector<8x128xf32>,
    return
  }
  func.func @transform_0(%arg0: i32, %arg1: i32) -> (i32, i32) {
    %c0_i32 = arith.constant 0 : i32
    %c0_i32_0 = arith.constant 0 : i32
    return %arg0, %c0_i32 : i32, i32
  }
  func.func @transform_1(%arg0: i32, %arg1: i32) -> (i32, i32) {
    %c0_i32 = arith.constant 0 : i32
    %c0_i32_0 = arith.constant 0 : i32
    %c0_i32_1 = arith.constant 0 : i32
    return %c0_i32, %c0_i32_0 : i32, i32
  }
  func.func @transform_2(%arg0: i32, %arg1: i32) -> (i32, i32) {
    %c0_i32 = arith.constant 0 : i32
    %c0_i32_0 = arith.constant 0 : i32
    %c0_i32_1 = arith.constant 0 : i32
    return %c0_i32, %c0_i32_0 : i32, i32
  }
  func.func @transform_3(%arg0: i32, %arg1: i32) -> (i32, i32) {
    %c0_i32 = arith.constant 0 : i32
    %c0_i32_0 = arith.constant 0 : i32
    %c0_i32_1 = arith.constant 0 : i32
    return %c0_i32, %c0_i32_0 : i32, i32
  }
  func.func @transform_4(%arg0: i32, %arg1: i32) -> (i32, i32) {
    %c0_i32 = arith.constant 0 : i32
    %c0_i32_0 = arith.constant 0 : i32
    %c0_i32_1 = arith.constant 0 : i32
    return %c0_i32, %c0_i32_0 : i32, i32
  }
  func.func @transform_5(%arg0: i32, %arg1: i32) -> (i32, i32) {
    %c0_i32 = arith.constant 0 : i32
    return %arg0, %arg1 : i32, i32
  }
}

module attributes {stable_mosaic.version = 11 : i64} {
  func.func @_mlp_fused_kernel(%arg0: i32, %arg1: i32, %arg2: memref<8x128xf32, #tpu.memory_space<vmem>>, %arg3: memref<128x128xbf16, #tpu.memory_space<vmem>>, %arg4: memref<1x128xf32, #tpu.memory_space<vmem>>, %arg5: memref<128x128xbf16, #tpu.memory_space<vmem>>, %arg6: memref<1x128xf32, #tpu.memory_space<vmem>>, %arg7: memref<8x128xf32, #tpu.memory_space<vmem>>, %arg8: memref<8x128xbf16, #tpu.memory_space<vmem>>) attributes {dimension_semantics = [#tpu.dimension_semantics<parallel>, #tpu.dimension_semantics<arbitrary>], iteration_bounds = array<i64: 1, 1>, scalar_prefetch = 0 : i64, scratch_operands = 1 : i64, tpu.core_type = #tpu.core_type<tc>, window_params = [{transform_indices = @transform_0, window_bounds = array<i64: 8, 128>}, {pipeline_mode = #tpu.pipeline_mode<synchronous>, transform_indices = @transform_1, window_bounds = array<i64: 128, 128>}, {pipeline_mode = #tpu.pipeline_mode<synchronous>, transform_indices = @transform_2, window_bounds = array<i64: 1, 128>}, {pipeline_mode = #tpu.pipeline_mode<synchronous>, transform_indices = @transform_3, window_bounds = array<i64: 128, 128>}, {pipeline_mode = #tpu.pipeline_mode<synchronous>, transform_indices = @transform_4, window_bounds = array<i64: 1, 128>}, {transform_indices = @transform_5, window_bounds = array<i64: 8, 128>}]} {
    %c0_i32 = arith.constant 0 : i32
    %0 = arith.cmpi eq, %arg1, %c0_i32 : i32
    %1 = arith.extui %0 : i1 to i32
    %c0_i32_0 = arith.constant 0 : i32
    %2 = arith.cmpi ne, %1, %c0_i32_0 : i32
    scf.if %2 {
      %c0_8 = arith.constant 0 : index
      %c0_9 = arith.constant 0 : index
      %10 = vector.load %arg2[%c0_8, %c0_9] : memref<8x128xf32, #tpu.memory_space<vmem>>, vector<8x128xf32>
      %c0_10 = arith.constant 0 : index
      %c0_11 = arith.constant 0 : index
      %11 = vector.load %arg3[%c0_10, %c0_11] : memref<128x128xbf16, #tpu.memory_space<vmem>>, vector<128x128xbf16>
      %c0_12 = arith.constant 0 : index
      %c0_13 = arith.constant 0 : index
      %12 = vector.load %arg4[%c0_12, %c0_13] : memref<1x128xf32, #tpu.memory_space<vmem>>, vector<1x128xf32>
      %13 = arith.truncf %10 : vector<8x128xf32> to vector<8x128xbf16>
      %cst_14 = arith.constant dense<0.000000e+00> : vector<8x128xf32>
      %14 = tpu.matmul %13, %11, %cst_14 {dimension_numbers = #tpu.dot_dimension_numbers<[1], [0], [0], [1], [0, 0, 1, 1], [], []>} : vector<8x128xbf16>, vector<128x128xbf16>, vector<8x128xf32> -> vector<8x128xf32>
      %15 = vector.broadcast %12 : vector<1x128xf32> to vector<8x128xf32>
      %16 = arith.addf %14, %15 : vector<8x128xf32>
      %17 = math.tanh %16 : vector<8x128xf32>
      %18 = arith.truncf %17 : vector<8x128xf32> to vector<8x128xbf16>
      %c0_15 = arith.constant 0 : index
      %c0_16 = arith.constant 0 : index
      %19 = vector.load %arg8[%c0_15, %c0_16] : memref<8x128xbf16, #tpu.memory_space<vmem>>, vector<8x128xbf16>
      tpu.vector_store %arg8[%c0_15, %c0_16], %18 {strides = array<i32>} : memref<8x128xbf16, #tpu.memory_space<vmem>>, vector<8x128xbf16>,
    } else {
    }
    %c0 = arith.constant 0 : index
    %c0_1 = arith.constant 0 : index
    %3 = vector.load %arg5[%c0, %c0_1] : memref<128x128xbf16, #tpu.memory_space<vmem>>, vector<128x128xbf16>
    %c0_2 = arith.constant 0 : index
    %c0_3 = arith.constant 0 : index
    %4 = vector.load %arg6[%c0_2, %c0_3] : memref<1x128xf32, #tpu.memory_space<vmem>>, vector<1x128xf32>
    %c0_4 = arith.constant 0 : index
    %c0_5 = arith.constant 0 : index
    %5 = vector.load %arg8[%c0_4, %c0_5] : memref<8x128xbf16, #tpu.memory_space<vmem>>, vector<8x128xbf16>
    %cst = arith.constant dense<0.000000e+00> : vector<8x128xf32>
    %6 = tpu.matmul %5, %3, %cst {dimension_numbers = #tpu.dot_dimension_numbers<[1], [0], [0], [1], [0, 0, 1, 1], [], []>} : vector<8x128xbf16>, vector<128x128xbf16>, vector<8x128xf32> -> vector<8x128xf32>
    %7 = vector.broadcast %4 : vector<1x128xf32> to vector<8x128xf32>
    %8 = arith.addf %6, %7 : vector<8x128xf32>
    %c0_6 = arith.constant 0 : index
    %c0_7 = arith.constant 0 : index
    %9 = vector.load %arg7[%c0_6, %c0_7] : memref<8x128xf32, #tpu.memory_space<vmem>>, vector<8x128xf32>
    tpu.vector_store %arg7[%c0_6, %c0_7], %8 {strides = array<i32>} : memref<8x128xf32, #tpu.memory_space<vmem>>, vector<8x128xf32>,
    return
  }
  func.func @transform_0(%arg0: i32, %arg1: i32) -> (i32, i32) {
    %c0_i32 = arith.constant 0 : i32
    %c0_i32_0 = arith.constant 0 : i32
    return %arg0, %c0_i32 : i32, i32
  }
  func.func @transform_1(%arg0: i32, %arg1: i32) -> (i32, i32) {
    %c0_i32 = arith.constant 0 : i32
    %c0_i32_0 = arith.constant 0 : i32
    %c0_i32_1 = arith.constant 0 : i32
    return %c0_i32, %c0_i32_0 : i32, i32
  }
  func.func @transform_2(%arg0: i32, %arg1: i32) -> (i32, i32) {
    %c0_i32 = arith.constant 0 : i32
    %c0_i32_0 = arith.constant 0 : i32
    %c0_i32_1 = arith.constant 0 : i32
    return %c0_i32, %c0_i32_0 : i32, i32
  }
  func.func @transform_3(%arg0: i32, %arg1: i32) -> (i32, i32) {
    %c0_i32 = arith.constant 0 : i32
    %c0_i32_0 = arith.constant 0 : i32
    %c0_i32_1 = arith.constant 0 : i32
    return %c0_i32, %c0_i32_0 : i32, i32
  }
  func.func @transform_4(%arg0: i32, %arg1: i32) -> (i32, i32) {
    %c0_i32 = arith.constant 0 : i32
    %c0_i32_0 = arith.constant 0 : i32
    %c0_i32_1 = arith.constant 0 : i32
    return %c0_i32, %c0_i32_0 : i32, i32
  }
  func.func @transform_5(%arg0: i32, %arg1: i32) -> (i32, i32) {
    %c0_i32 = arith.constant 0 : i32
    return %arg0, %arg1 : i32, i32
  }
}

</mosaic_0001>

<bundles_post_ra>
// kernel: tpu_custom_call.1
= control target key start
LH: loop header
LB: loop body
LE: loop exit
PB: predicated region body
PF: predicated region fallthrough
CT: control target
= control target key end

     0   :  { %10 = vsyncpa [#allocation4], 0  ;;  %s604_s0 = inlined_call_operand.hbm [shape: f32[8,128], index: 0, kind: input, shape index: {}]   ;;  %s605_s1 = inlined_call_operand.hbm [shape: bf16[128,128], index: 1, kind: input, shape index: {}]   ;;  %s606_s2 = inlined_call_operand.vmem [shape: f32[1,128], index: 2, kind: input, shape index: {}]   ;;  %s607_s3 = inlined_call_operand.hbm [shape: bf16[128,128], index: 3, kind: input, shape index: {}]   ;;  %s608_s4 = inlined_call_operand.vmem [shape: f32[1,128], index: 4, kind: input, shape index: {}]   ;;  %s609_s5 = inlined_call_operand.hbm [shape: f32[8,128], index: 5, kind: output, shape index: {}]  }
   0x1   :  { %11 = vsyncpa [#allocation7], 0 }
   0x2   :  { %12 = vsyncpa [#allocation5], 0  ;;  %s506_s18 = smov [#allocation6]   ;;  %s412_s22 = scalar_lea.hbm %s605_s1, 1024 }
   0x3   :  { %s28_s19 = sshll.u32 %s506_s18, 4  ;;  %p413_p0 = scmp.ne.s32.totalorder %s605_s1, %s412_s22  ;;  %s29_s19 = int_to_ptr.vmem [resolvable:$true] %s28_s19 }
   0x4   :  { %p416_p1 = scmp.lt.u32.totalorder %s412_s22, %s605_s1 }
   0x6   :  { %p418_p2 = pnand %p416_p1, %p413_p0 }
   0x8   :  { %421 = shalt.err (!%p418_p2)
}
   0x9   :  { %s422_s27 = scalar_lea.vmem %s29_s19, 1024  ;;  %p427_p4 = scmp.lt.s32.totalorder %s29_s19, %s29_s19 }
   0xa   :  { %p423_p3 = scmp.ne.s32.totalorder %s29_s19, %s422_s27  ;;  %p428_p5 = scmp.lt.s32.totalorder %s422_s27, %s422_s27 }
   0xc   :  { %p429_p6 = por %p428_p5, %p427_p4 }
   0xe   :  { %p430_p7 = pnand %p429_p6, %p423_p3 }
  0x10   :  { %433 = shalt.err (!%p430_p7)
}
  0x11   :  { %s507_s28 = smov 64   ;;  %s508_s29 = smov 4  }
  0x12   :  { %34 = dma.hbm_to_vmem [thread:$0]  %s605_s1, 1024, %s29_s19, [#allocation7], %s507_s28, %s507_s28, %s508_s29  }
  0x13   :  { %s509_s7 = smov [#allocation3]   ;;  %s510_s9 = smov [#allocation8]  }
  0x14   :  { %s19_s8 = sshll.u32 %s509_s7, 4  ;;  %s42_s10 = sshll.u32 %s510_s9, 4  ;;  %s20_s8 = int_to_ptr.vmem [resolvable:$true] %s19_s8  ;;  %s43_s10 = int_to_ptr.vmem [resolvable:$true] %s42_s10 }
  0x15   :  { %s434_s13 = scalar_lea.hbm %s604_s0, 128 }
  0x16   :  { %p435_p8 = scmp.ne.s32.totalorder %s604_s0, %s434_s13  ;;  %p438_p9 = scmp.lt.u32.totalorder %s434_s13, %s604_s0 }
  0x18   :  { %p440_p10 = pnand %p438_p9, %p435_p8 }
  0x1a   :  { %443 = shalt.err (!%p440_p10)
}
  0x1b   :  { %s444_s1 = scalar_lea.vmem %s20_s8, 128  ;;  %p449_p12 = scmp.lt.s32.totalorder %s20_s8, %s20_s8 }
  0x1c   :  { %p445_p11 = scmp.ne.s32.totalorder %s20_s8, %s444_s1  ;;  %p450_p13 = scmp.lt.s32.totalorder %s444_s1, %s444_s1 }
  0x1e   :  { %p451_p0 = por %p450_p13, %p449_p12 }
  0x20   :  { %p452_p1 = pnand %p451_p0, %p445_p11 }
  0x22   :  { %455 = shalt.err (!%p452_p1)
}
  0x23   :  { %22 = dma.hbm_to_vmem [thread:$0]  %s604_s0, 128, %s20_s8, [#allocation4]  }
  0x24   :  { %s456_s22 = scalar_lea.hbm %s607_s3, 1024 }
  0x25   :  { %p457_p2 = scmp.ne.s32.totalorder %s607_s3, %s456_s22  ;;  %p460_p3 = scmp.lt.u32.totalorder %s456_s22, %s607_s3 }
  0x27   :  { %p462_p4 = pnand %p460_p3, %p457_p2 }
  0x29   :  { %465 = shalt.err (!%p462_p4)
}
  0x2a   :  { %s466_s27 = scalar_lea.vmem %s43_s10, 1024  ;;  %p471_p6 = scmp.lt.s32.totalorder %s43_s10, %s43_s10 }
  0x2b   :  { %p467_p5 = scmp.ne.s32.totalorder %s43_s10, %s466_s27  ;;  %p472_p7 = scmp.lt.s32.totalorder %s466_s27, %s466_s27 }
  0x2d   :  { %p473_p8 = por %p472_p7, %p471_p6 }
  0x2f   :  { %p474_p9 = pnand %p473_p8, %p467_p5 }
  0x31   :  { %477 = shalt.err (!%p474_p9)
}
  0x32   :  { %48 = dma.hbm_to_vmem [thread:$0]  %s607_s3, 1024, %s43_s10, [#allocation7], %s507_s28, %s507_s28, %s508_s29  }
  0x33   :  { %500 = dma.done.wait [#allocation4], 128  }
  0x34   :  { %501 = vsyncadd [#allocation4], 4294967168 }
  0x35   :  { %502 = dma.done.wait [#allocation7], 2048  }
  0x36   :  { %503 = vsyncadd [#allocation7], 4294965248  ;;  %v511_v0 = vmov 0.0   ;;  %vm512_vm0 = vmmov 0   ;;  %v394_v1 = vld [vmem:[#allocation6] sm:$0xff]   ;;  %v395_v2 = vld [vmem:[#allocation6 + $0x8] sm:$0xff]  }
  0x37   :  { %346 = vmatprep.subr.bf16.mxu0 %v511_v0  ;;  %362 = vmatprep.mubr.msk.bf16.mxu0 %vm512_vm0, %v511_v0  ;;  %v396_v3 = vld [vmem:[#allocation6 + $0x10] sm:$0xff]   ;;  %v402_v4 = vld [vmem:[#allocation8] sm:$0xff]   ;;  %v397_v5 = vld [vmem:[#allocation6 + $0x18] sm:$0xff]   ;;  %s513_s7 = smov [#allocation9]  }
  0x38   :  { %366 = vmatprep.subr.bf16.mxu1 %v511_v0  ;;  %382 = vmatprep.mubr.msk.bf16.mxu1 %vm512_vm0, %v511_v0  ;;  %v403_v6 = vld [vmem:[#allocation8 + $0x8] sm:$0xff]   ;;  %v398_v7 = vld [vmem:[#allocation6 + $0x20] sm:$0xff]   ;;  %v400_v9 = vld [vmem:[#allocation6 + $0x30] sm:$0xff]   ;;  %s300_s8 = sshll.u32 %s513_s7, 4  ;;  %s301_s8 = int_to_ptr.vmem [resolvable:$true] %s300_s8 }
  0x39   :  { %347 = vmatpush3.bf16.msra.mxu0 %v394_v1  ;;  %367 = vmatpush3.bf16.msra.mxu1 %v402_v4  ;;  %v399_v8 = vld [vmem:[#allocation6 + $0x28] sm:$0xff]   ;;  %v401_v10 = vld [vmem:[#allocation6 + $0x38] sm:$0xff]   ;;  %v404_v13 = vld [vmem:[#allocation8 + $0x10] sm:$0xff]   ;;  %p483_p11 = scmp.lt.s32.totalorder %s301_s8, %s301_s8 }
  0x3a   :  { %348 = vmatprep.subr.bf16.mxu0 %v511_v0  ;;  %368 = vmatprep.subr.bf16.mxu1 %v511_v0  ;;  %v65_v11 = vld [vmem:[#allocation3] sm:$0xff]  ;;  %v406_v15 = vld [vmem:[#allocation8 + $0x20] sm:$0xff]   ;;  %v407_v16 = vld [vmem:[#allocation8 + $0x28] sm:$0xff]  }
  0x3b   :  { %v83_v12 = vpack.c.bf16 %v65_v11, %v65_v11  ;;  %v405_v14 = vld [vmem:[#allocation8 + $0x18] sm:$0xff]   ;;  %v408_v17 = vld [vmem:[#allocation8 + $0x30] sm:$0xff]  }
  0x3c   :  { %v409_v18 = vld [vmem:[#allocation8 + $0x38] sm:$0xff]   ;;  %v310_v19 = vld [vmem:[%s606_s2] ss:$0 sm:$0xff]  ;;  %s478_s2 = scalar_lea.vmem %s301_s8, 128 }
  0x3d   :  { %349 = vmatpush3.bf16.msra.mxu0 %v395_v2  ;;  %369 = vmatpush3.bf16.msra.mxu1 %v403_v6  ;;  %v319_v28 = vld [vmem:[%s608_s4] ss:$0 sm:$0xff]  ;;  %p479_p10 = scmp.ne.s32.totalorder %s301_s8, %s478_s2  ;;  %p484_p12 = scmp.lt.s32.totalorder %s478_s2, %s478_s2 }
  0x3e   :  { %350 = vmatprep.subr.bf16.mxu0 %v511_v0  ;;  %370 = vmatprep.subr.bf16.mxu1 %v511_v0 }
  0x3f   :  { %p485_p13 = por %p484_p12, %p483_p11 }
  0x41   :  { %351 = vmatpush3.bf16.msra.mxu0 %v396_v3  ;;  %371 = vmatpush3.bf16.msra.mxu1 %v404_v13  ;;  %p486_p0 = pnand %p485_p13, %p479_p10 }
  0x42   :  { %352 = vmatprep.subr.bf16.mxu0 %v511_v0  ;;  %372 = vmatprep.subr.bf16.mxu1 %v511_v0 }
  0x45   :  { %353 = vmatpush3.bf16.msra.mxu0 %v397_v5  ;;  %373 = vmatpush3.bf16.msra.mxu1 %v405_v14 }
  0x46   :  { %354 = vmatprep.subr.bf16.mxu0 %v511_v0  ;;  %374 = vmatprep.subr.bf16.mxu1 %v511_v0 }
  0x49   :  { %355 = vmatpush3.bf16.msra.mxu0 %v398_v7  ;;  %375 = vmatpush3.bf16.msra.mxu1 %v406_v15 }
  0x4a   :  { %356 = vmatprep.subr.bf16.mxu0 %v511_v0  ;;  %376 = vmatprep.subr.bf16.mxu1 %v511_v0 }
  0x4d   :  { %357 = vmatpush3.bf16.msra.mxu0 %v399_v8  ;;  %377 = vmatpush3.bf16.msra.mxu1 %v407_v16 }
  0x4e   :  { %358 = vmatprep.subr.bf16.mxu0 %v511_v0  ;;  %378 = vmatprep.subr.bf16.mxu1 %v511_v0 }
  0x51   :  { %359 = vmatpush3.bf16.msra.mxu0 %v400_v9  ;;  %379 = vmatpush3.bf16.msra.mxu1 %v408_v17 }
  0x52   :  { %360 = vmatprep.subr.bf16.mxu0 %v511_v0  ;;  %380 = vmatprep.subr.bf16.mxu1 %v511_v0 }
  0x55   :  { %361 = vmatpush3.bf16.msra.mxu0 %v401_v10  ;;  %381 = vmatpush3.bf16.msra.mxu1 %v409_v18 }
  0x58   :  { %363 = vmatmul.mubr.bf16.vlgmr.msra.gmra.mrb[0].mxu0 %v83_v12 }
 0x12b   :  { %v172_v20 = vpop.f32.mrb[0].mxu0 }
 0x12c   :  { %v173_v21 = vadd.f32 %v310_v19, %v172_v20  ;;  %v364_v22 = vpop.f32.mrb[1].mxu0 }
 0x12d   :  { %v175_v23 = vpop.f32.mrb[2].mxu0 }
 0x12e   :  { %410 = vtanh.f32 %v173_v21  ;;  %v365_v24 = vpop.f32.mrb[3].mxu0 }
 0x138   :  { %v411_v25 = vpop.eup %410 }
 0x139   :  { %v179_v26 = vpack.c.bf16 %v411_v25, %v411_v25 }
 0x13b   :  { %180 = vst [vmem:[#allocation2] sm:$0xf] %v179_v26 }
 0x142   :  { %v198_v27 = vld [vmem:[#allocation2] sm:$0xf] }
 0x143   :  { %383 = vmatmul.mubr.bf16.vlgmr.msra.gmra.mrb[0].mxu1 %v198_v27 }
 0x216   :  { %v287_v29 = vpop.f32.mrb[0].mxu1 }
 0x217   :  { %v288_v30 = vadd.f32 %v319_v28, %v287_v29  ;;  %v384_v31 = vpop.f32.mrb[1].mxu1 }
 0x218   :  { %v290_v32 = vpop.f32.mrb[2].mxu1 }
 0x219   :  { %293 = vst [vmem:[#allocation9] sm:$0xff] %v288_v30  ;;  %v385_v33 = vpop.f32.mrb[3].mxu1 }
 0x21a   :  { %489 = shalt.err (!%p486_p0)
}
 0x21b   :  { %s490_s4 = scalar_lea.hbm %s609_s5, 128 }
 0x21c   :  { %p491_p1 = scmp.ne.s32.totalorder %s609_s5, %s490_s4  ;;  %p494_p2 = scmp.lt.u32.totalorder %s490_s4, %s609_s5 }
 0x21e   :  { %p496_p3 = pnand %p494_p2, %p491_p1 }
 0x220   :  { %499 = shalt.err (!%p496_p3)
}
 0x221   :  { %303 = dma.vmem_to_hbm [thread:$0]  %s301_s8, 128, %s609_s5, [#allocation5]  }
 0x222   :  { %504 = dma.done.wait [#allocation5], 128  }
 0x223   :  { %505 = vsyncadd [#allocation5], 4294967168 }
 0x224   :  { %307 = vsyncpa [#allocation4], 1 }
 0x225   :  { %308 = vsyncpa [#allocation7], 1 }
 0x226   :  { %309 = vsyncpa [#allocation5], 1 }

// kernel: tpu_custom_call.1
= control target key start
LH: loop header
LB: loop body
LE: loop exit
PB: predicated region body
PF: predicated region fallthrough
CT: control target
= control target key end

     0   :  { %10 = vsyncpa [#allocation4], 0  ;;  %s604_s0 = inlined_call_operand.hbm [shape: f32[8,128], index: 0, kind: input, shape index: {}]   ;;  %s605_s1 = inlined_call_operand.hbm [shape: bf16[128,128], index: 1, kind: input, shape index: {}]   ;;  %s606_s2 = inlined_call_operand.vmem [shape: f32[1,128], index: 2, kind: input, shape index: {}]   ;;  %s607_s3 = inlined_call_operand.hbm [shape: bf16[128,128], index: 3, kind: input, shape index: {}]   ;;  %s608_s4 = inlined_call_operand.vmem [shape: f32[1,128], index: 4, kind: input, shape index: {}]   ;;  %s609_s5 = inlined_call_operand.hbm [shape: f32[8,128], index: 5, kind: output, shape index: {}]  }
   0x1   :  { %11 = vsyncpa [#allocation7], 0 }
   0x2   :  { %12 = vsyncpa [#allocation5], 0  ;;  %s506_s18 = smov [#allocation6]   ;;  %s412_s22 = scalar_lea.hbm %s605_s1, 1024 }
   0x3   :  { %s28_s19 = sshll.u32 %s506_s18, 4  ;;  %p413_p0 = scmp.ne.s32.totalorder %s605_s1, %s412_s22  ;;  %s29_s19 = int_to_ptr.vmem [resolvable:$true] %s28_s19 }
   0x4   :  { %p416_p1 = scmp.lt.u32.totalorder %s412_s22, %s605_s1 }
   0x6   :  { %p418_p2 = pnand %p416_p1, %p413_p0 }
   0x8   :  { %421 = shalt.err (!%p418_p2)
}
   0x9   :  { %s422_s27 = scalar_lea.vmem %s29_s19, 1024  ;;  %p427_p4 = scmp.lt.s32.totalorder %s29_s19, %s29_s19 }
   0xa   :  { %p423_p3 = scmp.ne.s32.totalorder %s29_s19, %s422_s27  ;;  %p428_p5 = scmp.lt.s32.totalorder %s422_s27, %s422_s27 }
   0xc   :  { %p429_p6 = por %p428_p5, %p427_p4 }
   0xe   :  { %p430_p7 = pnand %p429_p6, %p423_p3 }
  0x10   :  { %433 = shalt.err (!%p430_p7)
}
  0x11   :  { %s507_s28 = smov 64   ;;  %s508_s29 = smov 4  }
  0x12   :  { %34 = dma.hbm_to_vmem [thread:$0]  %s605_s1, 1024, %s29_s19, [#allocation7], %s507_s28, %s507_s28, %s508_s29  }
  0x13   :  { %s509_s7 = smov [#allocation3]   ;;  %s510_s9 = smov [#allocation8]  }
  0x14   :  { %s19_s8 = sshll.u32 %s509_s7, 4  ;;  %s42_s10 = sshll.u32 %s510_s9, 4  ;;  %s20_s8 = int_to_ptr.vmem [resolvable:$true] %s19_s8  ;;  %s43_s10 = int_to_ptr.vmem [resolvable:$true] %s42_s10 }
  0x15   :  { %s434_s13 = scalar_lea.hbm %s604_s0, 128 }
  0x16   :  { %p435_p8 = scmp.ne.s32.totalorder %s604_s0, %s434_s13  ;;  %p438_p9 = scmp.lt.u32.totalorder %s434_s13, %s604_s0 }
  0x18   :  { %p440_p10 = pnand %p438_p9, %p435_p8 }
  0x1a   :  { %443 = shalt.err (!%p440_p10)
}
  0x1b   :  { %s444_s1 = scalar_lea.vmem %s20_s8, 128  ;;  %p449_p12 = scmp.lt.s32.totalorder %s20_s8, %s20_s8 }
  0x1c   :  { %p445_p11 = scmp.ne.s32.totalorder %s20_s8, %s444_s1  ;;  %p450_p13 = scmp.lt.s32.totalorder %s444_s1, %s444_s1 }
  0x1e   :  { %p451_p0 = por %p450_p13, %p449_p12 }
  0x20   :  { %p452_p1 = pnand %p451_p0, %p445_p11 }
  0x22   :  { %455 = shalt.err (!%p452_p1)
}
  0x23   :  { %22 = dma.hbm_to_vmem [thread:$0]  %s604_s0, 128, %s20_s8, [#allocation4]  }
  0x24   :  { %s456_s22 = scalar_lea.hbm %s607_s3, 1024 }
  0x25   :  { %p457_p2 = scmp.ne.s32.totalorder %s607_s3, %s456_s22  ;;  %p460_p3 = scmp.lt.u32.totalorder %s456_s22, %s607_s3 }
  0x27   :  { %p462_p4 = pnand %p460_p3, %p457_p2 }
  0x29   :  { %465 = shalt.err (!%p462_p4)
}
  0x2a   :  { %s466_s27 = scalar_lea.vmem %s43_s10, 1024  ;;  %p471_p6 = scmp.lt.s32.totalorder %s43_s10, %s43_s10 }
  0x2b   :  { %p467_p5 = scmp.ne.s32.totalorder %s43_s10, %s466_s27  ;;  %p472_p7 = scmp.lt.s32.totalorder %s466_s27, %s466_s27 }
  0x2d   :  { %p473_p8 = por %p472_p7, %p471_p6 }
  0x2f   :  { %p474_p9 = pnand %p473_p8, %p467_p5 }
  0x31   :  { %477 = shalt.err (!%p474_p9)
}
  0x32   :  { %48 = dma.hbm_to_vmem [thread:$0]  %s607_s3, 1024, %s43_s10, [#allocation7], %s507_s28, %s507_s28, %s508_s29  }
  0x33   :  { %500 = dma.done.wait [#allocation4], 128  }
  0x34   :  { %501 = vsyncadd [#allocation4], 4294967168 }
  0x35   :  { %502 = dma.done.wait [#allocation7], 2048  }
  0x36   :  { %503 = vsyncadd [#allocation7], 4294965248  ;;  %v511_v0 = vmov 0.0   ;;  %vm512_vm0 = vmmov 0   ;;  %v394_v1 = vld [vmem:[#allocation6] sm:$0xff]   ;;  %v395_v2 = vld [vmem:[#allocation6 + $0x8] sm:$0xff]  }
  0x37   :  { %346 = vmatprep.subr.bf16.mxu0 %v511_v0  ;;  %362 = vmatprep.mubr.msk.bf16.mxu0 %vm512_vm0, %v511_v0  ;;  %v396_v3 = vld [vmem:[#allocation6 + $0x10] sm:$0xff]   ;;  %v402_v4 = vld [vmem:[#allocation8] sm:$0xff]   ;;  %v397_v5 = vld [vmem:[#allocation6 + $0x18] sm:$0xff]   ;;  %s513_s7 = smov [#allocation9]  }
  0x38   :  { %366 = vmatprep.subr.bf16.mxu1 %v511_v0  ;;  %382 = vmatprep.mubr.msk.bf16.mxu1 %vm512_vm0, %v511_v0  ;;  %v403_v6 = vld [vmem:[#allocation8 + $0x8] sm:$0xff]   ;;  %v398_v7 = vld [vmem:[#allocation6 + $0x20] sm:$0xff]   ;;  %v400_v9 = vld [vmem:[#allocation6 + $0x30] sm:$0xff]   ;;  %s300_s8 = sshll.u32 %s513_s7, 4  ;;  %s301_s8 = int_to_ptr.vmem [resolvable:$true] %s300_s8 }
  0x39   :  { %347 = vmatpush3.bf16.msra.mxu0 %v394_v1  ;;  %367 = vmatpush3.bf16.msra.mxu1 %v402_v4  ;;  %v399_v8 = vld [vmem:[#allocation6 + $0x28] sm:$0xff]   ;;  %v401_v10 = vld [vmem:[#allocation6 + $0x38] sm:$0xff]   ;;  %v404_v13 = vld [vmem:[#allocation8 + $0x10] sm:$0xff]   ;;  %p483_p11 = scmp.lt.s32.totalorder %s301_s8, %s301_s8 }
  0x3a   :  { %348 = vmatprep.subr.bf16.mxu0 %v511_v0  ;;  %368 = vmatprep.subr.bf16.mxu1 %v511_v0  ;;  %v65_v11 = vld [vmem:[#allocation3] sm:$0xff]  ;;  %v406_v15 = vld [vmem:[#allocation8 + $0x20] sm:$0xff]   ;;  %v407_v16 = vld [vmem:[#allocation8 + $0x28] sm:$0xff]  }
  0x3b   :  { %v83_v12 = vpack.c.bf16 %v65_v11, %v65_v11  ;;  %v405_v14 = vld [vmem:[#allocation8 + $0x18] sm:$0xff]   ;;  %v408_v17 = vld [vmem:[#allocation8 + $0x30] sm:$0xff]  }
  0x3c   :  { %v409_v18 = vld [vmem:[#allocation8 + $0x38] sm:$0xff]   ;;  %v310_v19 = vld [vmem:[%s606_s2] ss:$0 sm:$0xff]  ;;  %s478_s2 = scalar_lea.vmem %s301_s8, 128 }
  0x3d   :  { %349 = vmatpush3.bf16.msra.mxu0 %v395_v2  ;;  %369 = vmatpush3.bf16.msra.mxu1 %v403_v6  ;;  %v319_v28 = vld [vmem:[%s608_s4] ss:$0 sm:$0xff]  ;;  %p479_p10 = scmp.ne.s32.totalorder %s301_s8, %s478_s2  ;;  %p484_p12 = scmp.lt.s32.totalorder %s478_s2, %s478_s2 }
  0x3e   :  { %350 = vmatprep.subr.bf16.mxu0 %v511_v0  ;;  %370 = vmatprep.subr.bf16.mxu1 %v511_v0 }
  0x3f   :  { %p485_p13 = por %p484_p12, %p483_p11 }
  0x41   :  { %351 = vmatpush3.bf16.msra.mxu0 %v396_v3  ;;  %371 = vmatpush3.bf16.msra.mxu1 %v404_v13  ;;  %p486_p0 = pnand %p485_p13, %p479_p10 }
  0x42   :  { %352 = vmatprep.subr.bf16.mxu0 %v511_v0  ;;  %372 = vmatprep.subr.bf16.mxu1 %v511_v0 }
  0x45   :  { %353 = vmatpush3.bf16.msra.mxu0 %v397_v5  ;;  %373 = vmatpush3.bf16.msra.mxu1 %v405_v14 }
  0x46   :  { %354 = vmatprep.subr.bf16.mxu0 %v511_v0  ;;  %374 = vmatprep.subr.bf16.mxu1 %v511_v0 }
  0x49   :  { %355 = vmatpush3.bf16.msra.mxu0 %v398_v7  ;;  %375 = vmatpush3.bf16.msra.mxu1 %v406_v15 }
  0x4a   :  { %356 = vmatprep.subr.bf16.mxu0 %v511_v0  ;;  %376 = vmatprep.subr.bf16.mxu1 %v511_v0 }
  0x4d   :  { %357 = vmatpush3.bf16.msra.mxu0 %v399_v8  ;;  %377 = vmatpush3.bf16.msra.mxu1 %v407_v16 }
  0x4e   :  { %358 = vmatprep.subr.bf16.mxu0 %v511_v0  ;;  %378 = vmatprep.subr.bf16.mxu1 %v511_v0 }
  0x51   :  { %359 = vmatpush3.bf16.msra.mxu0 %v400_v9  ;;  %379 = vmatpush3.bf16.msra.mxu1 %v408_v17 }
  0x52   :  { %360 = vmatprep.subr.bf16.mxu0 %v511_v0  ;;  %380 = vmatprep.subr.bf16.mxu1 %v511_v0 }
  0x55   :  { %361 = vmatpush3.bf16.msra.mxu0 %v401_v10  ;;  %381 = vmatpush3.bf16.msra.mxu1 %v409_v18 }
  0x58   :  { %363 = vmatmul.mubr.bf16.vlgmr.msra.gmra.mrb[0].mxu0 %v83_v12 }
 0x12b   :  { %v172_v20 = vpop.f32.mrb[0].mxu0 }
 0x12c   :  { %v173_v21 = vadd.f32 %v310_v19, %v172_v20  ;;  %v364_v22 = vpop.f32.mrb[1].mxu0 }
 0x12d   :  { %v175_v23 = vpop.f32.mrb[2].mxu0 }
 0x12e   :  { %410 = vtanh.f32 %v173_v21  ;;  %v365_v24 = vpop.f32.mrb[3].mxu0 }
 0x138   :  { %v411_v25 = vpop.eup %410 }
 0x139   :  { %v179_v26 = vpack.c.bf16 %v411_v25, %v411_v25 }
 0x13b   :  { %180 = vst [vmem:[#allocation2] sm:$0xf] %v179_v26 }
 0x142   :  { %v198_v27 = vld [vmem:[#allocation2] sm:$0xf] }
 0x143   :  { %383 = vmatmul.mubr.bf16.vlgmr.msra.gmra.mrb[0].mxu1 %v198_v27 }
 0x216   :  { %v287_v29 = vpop.f32.mrb[0].mxu1 }
 0x217   :  { %v288_v30 = vadd.f32 %v319_v28, %v287_v29  ;;  %v384_v31 = vpop.f32.mrb[1].mxu1 }
 0x218   :  { %v290_v32 = vpop.f32.mrb[2].mxu1 }
 0x219   :  { %293 = vst [vmem:[#allocation9] sm:$0xff] %v288_v30  ;;  %v385_v33 = vpop.f32.mrb[3].mxu1 }
 0x21a   :  { %489 = shalt.err (!%p486_p0)
}
 0x21b   :  { %s490_s4 = scalar_lea.hbm %s609_s5, 128 }
 0x21c   :  { %p491_p1 = scmp.ne.s32.totalorder %s609_s5, %s490_s4  ;;  %p494_p2 = scmp.lt.u32.totalorder %s490_s4, %s609_s5 }
 0x21e   :  { %p496_p3 = pnand %p494_p2, %p491_p1 }
 0x220   :  { %499 = shalt.err (!%p496_p3)
}
 0x221   :  { %303 = dma.vmem_to_hbm [thread:$0]  %s301_s8, 128, %s609_s5, [#allocation5]  }
 0x222   :  { %504 = dma.done.wait [#allocation5], 128  }
 0x223   :  { %505 = vsyncadd [#allocation5], 4294967168 }
 0x224   :  { %307 = vsyncpa [#allocation4], 1 }
 0x225   :  { %308 = vsyncpa [#allocation7], 1 }
 0x226   :  { %309 = vsyncpa [#allocation5], 1 }

</bundles_post_ra>
